<compile_context>
chip_gen: v7x
topology: tpu7x:2x2x1
jax: 0.10.0
libtpu: 0.0.40
codegen_flags: <defaults>
</compile_context>

<pallas_src>
from functools import partial

import jax
import jax.numpy as jnp
from jax.experimental import pallas as pl
from jax.experimental.pallas import tpu as pltpu


def _mhsa_kernel(x_ref, lnw_ref, lnb_ref, wqkv_ref, bqkv_ref, wo_ref, bo_ref,
                 *out_refs,
                 batches, seq_len, num_heads, head_dim, eps, need_weights):
    out_ref = out_refs[0]
    Bb, L, H, Dh = batches, seq_len, num_heads, head_dim
    N = Bb * L
    E = H * Dh

    # ---- LayerNorm over last dim (f32, biased variance, eps=1e-5) ----
    x = x_ref[...].astype(jnp.float32)                          # (N, E)
    mean = jnp.mean(x, axis=-1, keepdims=True)
    var = jnp.mean((x - mean) ** 2, axis=-1, keepdims=True)
    y = (x - mean) * jax.lax.rsqrt(var + eps)
    y = y * lnw_ref[...] + lnb_ref[...]                          # (1, E) broadcasts

    # ---- Fused Q/K/V projection: ONE (N, E) @ (E, 3E) MXU pass ----
    # (softmax scale 1/sqrt(Dh) pre-folded into the Q columns / bias).
    qkv = jnp.dot(y.astype(jnp.bfloat16), wqkv_ref[...],
                  preferred_element_type=jnp.float32) + bqkv_ref[...]   # (N, 3E)

    def to_groups(t2d):
        # (N, E) -> (H*Bb, L, Dh): static lane slices per head, concatenated
        # along the leading (major) axis -> pure reshape to grouped form.
        heads = [t2d[:, h * Dh:(h + 1) * Dh] for h in range(H)]
        return (jnp.concatenate(heads, axis=0)
                .reshape(H * Bb, L, Dh)
                .astype(jnp.bfloat16))

    qg = to_groups(qkv[:, 0 * E:1 * E])                          # (H*Bb, L, Dh)
    kg = to_groups(qkv[:, 1 * E:2 * E])
    vg = to_groups(qkv[:, 2 * E:3 * E])

    # ---- scaled dot-product attention, batched over (head, batch) groups ----
    s = jnp.einsum("gld,gmd->glm", qg, kg,
                   preferred_element_type=jnp.float32)           # (H*Bb, L, L)
    s = s - jnp.max(s, axis=-1, keepdims=True)
    p = jnp.exp(s)
    p = p / jnp.sum(p, axis=-1, keepdims=True)                   # exact softmax
    # TODO(synk): attention dropout not applied (inference semantics, p=0).

    ctx = jnp.einsum("glm,gmd->gld", p.astype(jnp.bfloat16), vg,
                     preferred_element_type=jnp.float32)         # (H*Bb, L, Dh)

    # Lane-concatenate per-head context back to (N, E) (heads along lanes),
    # then ONE (N, E) @ (E, E) output-projection MXU pass.
    ctx2 = jnp.concatenate(
        [ctx[h * Bb:(h + 1) * Bb].reshape(N, Dh) for h in range(H)], axis=1)
    out = jnp.dot(ctx2.astype(jnp.bfloat16), wo_ref[...],
                  preferred_element_type=jnp.float32) + bo_ref[...]
    out_ref[...] = out.astype(out_ref.dtype)

    if need_weights:
        attnw_ref = out_refs[1]
        # (H*Bb, L, L) -> (H, Bb*L, L): leading-dim reshape; average over heads.
        pw = jnp.mean(p.reshape(H, N, L), axis=0)                # (N, L)
        attnw_ref[...] = pw.astype(attnw_ref.dtype)


def prepare_params(params, *, num_heads, matmul_dtype=jnp.bfloat16):
    """One-time prep: fused QKV weight, folded softmax scale, bf16 matmul weights."""
    E = params["wq"].shape[0]
    H = num_heads
    Dh = E // H
    assert Dh * H == E
    scale = 1.0 / float(Dh) ** 0.5

    # q/k/v = y @ w?.T + b?  ->  qkv = y @ [wq.T*s | wk.T | wv.T] + [bq*s|bk|bv]
    wqkv = jnp.concatenate(
        [(params["wq"] * scale).T, params["wk"].T, params["wv"].T], axis=1)
    bqkv = jnp.concatenate([params["bq"] * scale, params["bk"], params["bv"]])

    return {
        "num_heads": H,
        "wqkv": wqkv.astype(matmul_dtype),                       # (E, 3E)
        "bqkv": bqkv.reshape(1, 3 * E).astype(jnp.float32),
        "wo": params["wo"].T.astype(matmul_dtype),               # (E, E)
        "bo": params["bo"].reshape(1, E).astype(jnp.float32),
        "ln_w": params["ln_w"].reshape(1, E).astype(jnp.float32),
        "ln_b": params["ln_b"].reshape(1, E).astype(jnp.float32),
    }


def mhsa_block(x, prep, *, need_weights=True, eps=1e-5, batches_per_block=None):
    """x: (B, L, E). Returns (output (B, L, E), attn_weights (B, L, L) or None)."""
    B, L, E = x.shape
    H = prep["num_heads"]
    Dh = E // H
    assert H * Dh == E

    if batches_per_block is None:
        # Aim for >=256 matmul rows per grid step (v6e advice) while keeping
        # a parallel row axis available for the 2 TCs on v7x at large B.
        batches_per_block = min(B, max(1, 256 // L))
    bb = batches_per_block
    assert B % bb == 0
    G = B // bb
    N, Nb = B * L, bb * L

    x_flat = x.reshape(N, E)

    def const_spec(shape):
        return pl.BlockSpec(shape, lambda g: (0,) * len(shape))

    def row_spec(cols):
        return pl.BlockSpec((Nb, cols), lambda g: (g, 0))

    in_specs = [
        row_spec(E),                                     # x rows for this block
        const_spec((1, E)), const_spec((1, E)),          # ln_w, ln_b
        const_spec((E, 3 * E)), const_spec((1, 3 * E)),  # wqkv, bqkv
        const_spec((E, E)), const_spec((1, E)),          # wo, bo
    ]

    if need_weights:
        out_shape = (jax.ShapeDtypeStruct((N, E), x.dtype),
                     jax.ShapeDtypeStruct((N, L), jnp.float32))
        out_specs = (row_spec(E), row_spec(L))
    else:
        out_shape = jax.ShapeDtypeStruct((N, E), x.dtype)
        out_specs = row_spec(E)

    flops = 2 * N * E * 3 * E + 2 * N * E * E + 4 * B * H * L * L * Dh
    transcendentals = B * H * L * L + N
    bytes_accessed = (2 * N * E * 4                     # x in, out
                      + 4 * E * E * 2                   # bf16 weights
                      + (3 * E + 5 * E) * 4             # biases / ln params
                      + (N * L * 4 if need_weights else 0))

    kernel = partial(_mhsa_kernel, batches=bb, seq_len=L, num_heads=H,
                     head_dim=Dh, eps=eps, need_weights=need_weights)

    outs = pl.pallas_call(
        kernel,
        out_shape=out_shape,
        grid=(G,),
        in_specs=in_specs,
        out_specs=out_specs,
        compiler_params=pltpu.CompilerParams(
            dimension_semantics=("parallel",),
            vmem_limit_bytes=32 * 1024 * 1024),
        cost_estimate=pl.CostEstimate(flops=flops,
                                      transcendentals=transcendentals,
                                      bytes_accessed=bytes_accessed),
    )(x_flat, prep["ln_w"], prep["ln_b"],
      prep["wqkv"], prep["bqkv"], prep["wo"], prep["bo"])

    if need_weights:
        out_flat, attn_flat = outs
        return out_flat.reshape(B, L, E), attn_flat.reshape(B, L, L)
    return outs.reshape(B, L, E), None


def _reference(x, params, *, num_heads):
    """Pure-JAX f32 reference mirroring torch LayerNorm + MultiheadAttention."""
    B, L, E = x.shape
    hd = E // num_heads
    mean = jnp.mean(x, axis=-1, keepdims=True)
    var = jnp.mean((x - mean) ** 2, axis=-1, keepdims=True)
    y = (x - mean) / jnp.sqrt(var + 1e-5) * params["ln_w"] + params["ln_b"]

    q = y @ params["wq"].T + params["bq"]
    k = y @ params["wk"].T + params["bk"]
    v = y @ params["wv"].T + params["bv"]

    def split(t):  # (B,L,E) -> (B,H,L,Dh)
        return t.reshape(B, L, num_heads, hd).transpose(0, 2, 1, 3)

    qh, kh, vh = split(q), split(k), split(v)
    s = jnp.einsum("bhld,bhmd->bhlm", qh * (1.0 / hd ** 0.5), kh)
    p = jax.nn.softmax(s, axis=-1)
    ctx = jnp.einsum("bhlm,bhmd->bhld", p, vh)
    ctx = ctx.transpose(0, 2, 1, 3).reshape(B, L, E)
    out = ctx @ params["wo"].T + params["bo"]
    return out, p.mean(axis=1)


def init_params(key, embed_dim):
    ks = jax.random.split(key, 6)
    scale = 0.1
    return {
        "ln_w": jnp.ones((embed_dim,), jnp.float32),
        "ln_b": jnp.zeros((embed_dim,), jnp.float32),
        "wq": scale * jax.random.normal(ks[0], (embed_dim, embed_dim), jnp.float32),
        "wk": scale * jax.random.normal(ks[1], (embed_dim, embed_dim), jnp.float32),
        "wv": scale * jax.random.normal(ks[2], (embed_dim, embed_dim), jnp.float32),
        "bq": scale * jax.random.normal(ks[3], (embed_dim,), jnp.float32),
        "bk": jnp.zeros((embed_dim,), jnp.float32),
        "bv": jnp.zeros((embed_dim,), jnp.float32),
        "wo": scale * jax.random.normal(ks[4], (embed_dim, embed_dim), jnp.float32),
        "bo": scale * jax.random.normal(ks[5], (embed_dim,), jnp.float32),
    }


if __name__ == "__main__":
    config = {"embedding_dims": 32, "num_heads": 4, "attn_dropout": 0.0}
    B, L, E = 2, 8, config["embedding_dims"]

    key = jax.random.PRNGKey(0)
    kx, kp = jax.random.split(key)
    x = jax.random.normal(kx, (B, L, E), jnp.float32)
    params = init_params(kp, E)
    prep = prepare_params(params, num_heads=config["num_heads"])

    out, attn_w = mhsa_block(x, prep, need_weights=True)
    jax.block_until_ready((out, attn_w))

    ref_out, ref_attn = _reference(x, params, num_heads=config["num_heads"])
    assert out.shape == (B, L, E) and attn_w.shape == (B, L, L)
    # bf16 MXU operands -> slightly looser tolerance than a pure-f32 kernel.
    assert jnp.allclose(out, ref_out, atol=2e-2, rtol=2e-2), \
        float(jnp.max(jnp.abs(out - ref_out)))
    assert jnp.allclose(attn_w, ref_attn, atol=2e-2, rtol=2e-2), \
        float(jnp.max(jnp.abs(attn_w - ref_attn)))

    print("KERNEL_OK")
</pallas_src>

<mosaic_0001>
module attributes {stable_mosaic.version = 11 : i64} {
  func.func @_mhsa_kernel(%arg0: i32, %arg1: memref<16x32xf32, #tpu.memory_space<vmem>>, %arg2: memref<1x32xf32, #tpu.memory_space<vmem>>, %arg3: memref<1x32xf32, #tpu.memory_space<vmem>>, %arg4: memref<32x96xbf16, #tpu.memory_space<vmem>>, %arg5: memref<1x96xf32, #tpu.memory_space<vmem>>, %arg6: memref<32x32xbf16, #tpu.memory_space<vmem>>, %arg7: memref<1x32xf32, #tpu.memory_space<vmem>>, %arg8: memref<16x32xf32, #tpu.memory_space<vmem>>, %arg9: memref<16x8xf32, #tpu.memory_space<vmem>>) attributes {dimension_semantics = [#tpu.dimension_semantics<parallel>], iteration_bounds = array<i64: 1>, scalar_prefetch = 0 : i64, scratch_operands = 0 : i64, tpu.core_type = #tpu.core_type<tc>, window_params = [{transform_indices = @transform_0, window_bounds = array<i64: 16, 32>}, {pipeline_mode = #tpu.pipeline_mode<synchronous>, transform_indices = @transform_1, window_bounds = array<i64: 1, 32>}, {pipeline_mode = #tpu.pipeline_mode<synchronous>, transform_indices = @transform_2, window_bounds = array<i64: 1, 32>}, {pipeline_mode = #tpu.pipeline_mode<synchronous>, transform_indices = @transform_3, window_bounds = array<i64: 32, 96>}, {pipeline_mode = #tpu.pipeline_mode<synchronous>, transform_indices = @transform_4, window_bounds = array<i64: 1, 96>}, {pipeline_mode = #tpu.pipeline_mode<synchronous>, transform_indices = @transform_5, window_bounds = array<i64: 32, 32>}, {pipeline_mode = #tpu.pipeline_mode<synchronous>, transform_indices = @transform_6, window_bounds = array<i64: 1, 32>}, {transform_indices = @transform_7, window_bounds = array<i64: 16, 32>}, {transform_indices = @transform_8, window_bounds = array<i64: 16, 8>}]} {
    %c0 = arith.constant 0 : index
    %c0_0 = arith.constant 0 : index
    %0 = vector.load %arg1[%c0, %c0_0] : memref<16x32xf32, #tpu.memory_space<vmem>>, vector<16x32xf32>
    %cst = arith.constant dense<0.000000e+00> : vector<16xf32>
    %1 = vector.multi_reduction <add>, %0, %cst [1] : vector<16x32xf32> to vector<16xf32>
    %2 = vector.shape_cast %1 : vector<16xf32> to vector<16x1xf32>
    %cst_1 = arith.constant 3.200000e+01 : f32
    %3 = vector.broadcast %cst_1 : f32 to vector<16x1xf32>
    %4 = arith.divf %2, %3 : vector<16x1xf32>
    %5 = vector.broadcast %4 : vector<16x1xf32> to vector<16x32xf32>
    %6 = arith.subf %0, %5 : vector<16x32xf32>
    %7 = arith.mulf %6, %6 : vector<16x32xf32>
    %cst_2 = arith.constant dense<0.000000e+00> : vector<16xf32>
    %8 = vector.multi_reduction <add>, %7, %cst_2 [1] : vector<16x32xf32> to vector<16xf32>
    %9 = vector.shape_cast %8 : vector<16xf32> to vector<16x1xf32>
    %cst_3 = arith.constant 3.200000e+01 : f32
    %10 = vector.broadcast %cst_3 : f32 to vector<16x1xf32>
    %11 = arith.divf %9, %10 : vector<16x1xf32>
    %12 = vector.broadcast %4 : vector<16x1xf32> to vector<16x32xf32>
    %13 = arith.subf %0, %12 : vector<16x32xf32>
    %cst_4 = arith.constant 9.99999974E-6 : f32
    %14 = vector.broadcast %cst_4 : f32 to vector<16x1xf32>
    %15 = arith.addf %11, %14 : vector<16x1xf32>
    %16 = math.rsqrt %15 : vector<16x1xf32>
    %17 = vector.broadcast %16 : vector<16x1xf32> to vector<16x32xf32>
    %18 = arith.mulf %13, %17 : vector<16x32xf32>
    %c0_5 = arith.constant 0 : index
    %c0_6 = arith.constant 0 : index
    %19 = vector.load %arg2[%c0_5, %c0_6] : memref<1x32xf32, #tpu.memory_space<vmem>>, vector<1x32xf32>
    %20 = vector.broadcast %19 : vector<1x32xf32> to vector<16x32xf32>
    %21 = arith.mulf %18, %20 : vector<16x32xf32>
    %c0_7 = arith.constant 0 : index
    %c0_8 = arith.constant 0 : index
    %22 = vector.load %arg3[%c0_7, %c0_8] : memref<1x32xf32, #tpu.memory_space<vmem>>, vector<1x32xf32>
    %23 = vector.broadcast %22 : vector<1x32xf32> to vector<16x32xf32>
    %24 = arith.addf %21, %23 : vector<16x32xf32>
    %25 = arith.truncf %24 : vector<16x32xf32> to vector<16x32xbf16>
    %c0_9 = arith.constant 0 : index
    %c0_10 = arith.constant 0 : index
    %26 = vector.load %arg4[%c0_9, %c0_10] : memref<32x96xbf16, #tpu.memory_space<vmem>>, vector<32x96xbf16>
    %cst_11 = arith.constant dense<0.000000e+00> : vector<16x96xf32>
    %27 = tpu.matmul %25, %26, %cst_11 {dimension_numbers = #tpu.dot_dimension_numbers<[1], [0], [0], [1], [0, 0, 1, 1], [], []>} : vector<16x32xbf16>, vector<32x96xbf16>, vector<16x96xf32> -> vector<16x96xf32>
    %c0_12 = arith.constant 0 : index
    %c0_13 = arith.constant 0 : index
    %28 = vector.load %arg5[%c0_12, %c0_13] : memref<1x96xf32, #tpu.memory_space<vmem>>, vector<1x96xf32>
    %29 = vector.broadcast %28 : vector<1x96xf32> to vector<16x96xf32>
    %30 = arith.addf %27, %29 : vector<16x96xf32>
    %31 = vector.extract_strided_slice %30 {offsets = [0, 0], sizes = [16, 32], strides = [1, 1]} : vector<16x96xf32> to vector<16x32xf32>
    %32 = vector.extract_strided_slice %31 {offsets = [0, 0], sizes = [16, 8], strides = [1, 1]} : vector<16x32xf32> to vector<16x8xf32>
    %33 = vector.extract_strided_slice %31 {offsets = [0, 8], sizes = [16, 8], strides = [1, 1]} : vector<16x32xf32> to vector<16x8xf32>
    %34 = vector.extract_strided_slice %31 {offsets = [0, 16], sizes = [16, 8], strides = [1, 1]} : vector<16x32xf32> to vector<16x8xf32>
    %35 = vector.extract_strided_slice %31 {offsets = [0, 24], sizes = [16, 8], strides = [1, 1]} : vector<16x32xf32> to vector<16x8xf32>
    %36 = tpu.concatenate %32, %33, %34, %35 in 0 : vector<16x8xf32>, vector<16x8xf32>, vector<16x8xf32>, vector<16x8xf32> -> vector<64x8xf32>
    %37 = vector.shape_cast %36 : vector<64x8xf32> to vector<8x8x8xf32>
    %38 = arith.truncf %37 : vector<8x8x8xf32> to vector<8x8x8xbf16>
    %39 = vector.extract_strided_slice %30 {offsets = [0, 32], sizes = [16, 32], strides = [1, 1]} : vector<16x96xf32> to vector<16x32xf32>
    %40 = vector.extract_strided_slice %39 {offsets = [0, 0], sizes = [16, 8], strides = [1, 1]} : vector<16x32xf32> to vector<16x8xf32>
    %41 = vector.extract_strided_slice %39 {offsets = [0, 8], sizes = [16, 8], strides = [1, 1]} : vector<16x32xf32> to vector<16x8xf32>
    %42 = vector.extract_strided_slice %39 {offsets = [0, 16], sizes = [16, 8], strides = [1, 1]} : vector<16x32xf32> to vector<16x8xf32>
    %43 = vector.extract_strided_slice %39 {offsets = [0, 24], sizes = [16, 8], strides = [1, 1]} : vector<16x32xf32> to vector<16x8xf32>
    %44 = tpu.concatenate %40, %41, %42, %43 in 0 : vector<16x8xf32>, vector<16x8xf32>, vector<16x8xf32>, vector<16x8xf32> -> vector<64x8xf32>
    %45 = vector.shape_cast %44 : vector<64x8xf32> to vector<8x8x8xf32>
    %46 = arith.truncf %45 : vector<8x8x8xf32> to vector<8x8x8xbf16>
    %47 = vector.extract_strided_slice %30 {offsets = [0, 64], sizes = [16, 32], strides = [1, 1]} : vector<16x96xf32> to vector<16x32xf32>
    %48 = vector.extract_strided_slice %47 {offsets = [0, 0], sizes = [16, 8], strides = [1, 1]} : vector<16x32xf32> to vector<16x8xf32>
    %49 = vector.extract_strided_slice %47 {offsets = [0, 8], sizes = [16, 8], strides = [1, 1]} : vector<16x32xf32> to vector<16x8xf32>
    %50 = vector.extract_strided_slice %47 {offsets = [0, 16], sizes = [16, 8], strides = [1, 1]} : vector<16x32xf32> to vector<16x8xf32>
    %51 = vector.extract_strided_slice %47 {offsets = [0, 24], sizes = [16, 8], strides = [1, 1]} : vector<16x32xf32> to vector<16x8xf32>
    %52 = tpu.concatenate %48, %49, %50, %51 in 0 : vector<16x8xf32>, vector<16x8xf32>, vector<16x8xf32>, vector<16x8xf32> -> vector<64x8xf32>
    %53 = vector.shape_cast %52 : vector<64x8xf32> to vector<8x8x8xf32>
    %54 = arith.truncf %53 : vector<8x8x8xf32> to vector<8x8x8xbf16>
    "tpu.trace_start"() <{level = 10 : i32, message = "gld,gmd->glm"}> : () -> ()
    %cst_14 = arith.constant dense<0.000000e+00> : vector<8x8x8xf32>
    %55 = tpu.matmul %38, %46, %cst_14 {dimension_numbers = #tpu.dot_dimension_numbers<[2], [2], [1], [1], [0, 0, 0, 1, 1, 1], [0], [0]>} : vector<8x8x8xbf16>, vector<8x8x8xbf16>, vector<8x8x8xf32> -> vector<8x8x8xf32>
    "tpu.trace_stop"() : () -> ()
    %cst_15 = arith.constant dense<0xFF800000> : vector<8x8xf32>
    %56 = vector.multi_reduction <maximumf>, %55, %cst_15 [2] : vector<8x8x8xf32> to vector<8x8xf32>
    %57 = vector.shape_cast %56 : vector<8x8xf32> to vector<8x8x1xf32>
    %58 = vector.broadcast %57 : vector<8x8x1xf32> to vector<8x8x8xf32>
    %59 = arith.subf %55, %58 : vector<8x8x8xf32>
    %60 = math.exp %59 : vector<8x8x8xf32>
    %cst_16 = arith.constant dense<0.000000e+00> : vector<8x8xf32>
    %61 = vector.multi_reduction <add>, %60, %cst_16 [2] : vector<8x8x8xf32> to vector<8x8xf32>
    %62 = vector.shape_cast %61 : vector<8x8xf32> to vector<8x8x1xf32>
    %63 = vector.broadcast %62 : vector<8x8x1xf32> to vector<8x8x8xf32>
    %64 = arith.divf %60, %63 : vector<8x8x8xf32>
    %65 = arith.truncf %64 : vector<8x8x8xf32> to vector<8x8x8xbf16>
    "tpu.trace_start"() <{level = 10 : i32, message = "glm,gmd->gld"}> : () -> ()
    %cst_17 = arith.constant dense<0.000000e+00> : vector<8x8x8xf32>
    %66 = tpu.matmul %65, %54, %cst_17 {dimension_numbers = #tpu.dot_dimension_numbers<[2], [1], [1], [2], [0, 0, 0, 1, 1, 2], [0], [0]>} : vector<8x8x8xbf16>, vector<8x8x8xbf16>, vector<8x8x8xf32> -> vector<8x8x8xf32>
    "tpu.trace_stop"() : () -> ()
    %67 = vector.extract_strided_slice %66 {offsets = [0, 0, 0], sizes = [2, 8, 8], strides = [1, 1, 1]} : vector<8x8x8xf32> to vector<2x8x8xf32>
    %68 = vector.shape_cast %67 : vector<2x8x8xf32> to vector<16x8xf32>
    %69 = vector.extract_strided_slice %66 {offsets = [2, 0, 0], sizes = [2, 8, 8], strides = [1, 1, 1]} : vector<8x8x8xf32> to vector<2x8x8xf32>
    %70 = vector.shape_cast %69 : vector<2x8x8xf32> to vector<16x8xf32>
    %71 = vector.extract_strided_slice %66 {offsets = [4, 0, 0], sizes = [2, 8, 8], strides = [1, 1, 1]} : vector<8x8x8xf32> to vector<2x8x8xf32>
    %72 = vector.shape_cast %71 : vector<2x8x8xf32> to vector<16x8xf32>
    %73 = vector.extract_strided_slice %66 {offsets = [6, 0, 0], sizes = [2, 8, 8], strides = [1, 1, 1]} : vector<8x8x8xf32> to vector<2x8x8xf32>
    %74 = vector.shape_cast %73 : vector<2x8x8xf32> to vector<16x8xf32>
    %75 = tpu.concatenate %68, %70, %72, %74 in 1 : vector<16x8xf32>, vector<16x8xf32>, vector<16x8xf32>, vector<16x8xf32> -> vector<16x32xf32>
    %76 = arith.truncf %75 : vector<16x32xf32> to vector<16x32xbf16>
    %c0_18 = arith.constant 0 : index
    %c0_19 = arith.constant 0 : index
    %77 = vector.load %arg6[%c0_18, %c0_19] : memref<32x32xbf16, #tpu.memory_space<vmem>>, vector<32x32xbf16>
    %cst_20 = arith.constant dense<0.000000e+00> : vector<16x32xf32>
    %78 = tpu.matmul %76, %77, %cst_20 {dimension_numbers = #tpu.dot_dimension_numbers<[1], [0], [0], [1], [0, 0, 1, 1], [], []>} : vector<16x32xbf16>, vector<32x32xbf16>, vector<16x32xf32> -> vector<16x32xf32>
    %c0_21 = arith.constant 0 : index
    %c0_22 = arith.constant 0 : index
    %79 = vector.load %arg7[%c0_21, %c0_22] : memref<1x32xf32, #tpu.memory_space<vmem>>, vector<1x32xf32>
    %80 = vector.broadcast %79 : vector<1x32xf32> to vector<16x32xf32>
    %81 = arith.addf %78, %80 : vector<16x32xf32>
    %c0_23 = arith.constant 0 : index
    %c0_24 = arith.constant 0 : index
    %82 = vector.load %arg8[%c0_23, %c0_24] : memref<16x32xf32, #tpu.memory_space<vmem>>, vector<16x32xf32>
    tpu.vector_store %arg8[%c0_23, %c0_24], %81 {strides = array<i32>} : memref<16x32xf32, #tpu.memory_space<vmem>>, vector<16x32xf32>,
    %83 = vector.shape_cast %64 : vector<8x8x8xf32> to vector<4x16x8xf32>
    %cst_25 = arith.constant dense<0.000000e+00> : vector<16x8xf32>
    %84 = vector.multi_reduction <add>, %83, %cst_25 [0] : vector<4x16x8xf32> to vector<16x8xf32>
    %cst_26 = arith.constant 4.000000e+00 : f32
    %85 = vector.broadcast %cst_26 : f32 to vector<16x8xf32>
    %86 = arith.divf %84, %85 : vector<16x8xf32>
    %c0_27 = arith.constant 0 : index
    %c0_28 = arith.constant 0 : index
    %87 = vector.load %arg9[%c0_27, %c0_28] : memref<16x8xf32, #tpu.memory_space<vmem>>, vector<16x8xf32>
    tpu.vector_store %arg9[%c0_27, %c0_28], %86 {strides = array<i32>} : memref<16x8xf32, #tpu.memory_space<vmem>>, vector<16x8xf32>,
    return
  }
  func.func @transform_0(%arg0: i32) -> (i32, i32) {
    %c0_i32 = arith.constant 0 : i32
    %c0_i32_0 = arith.constant 0 : i32
    return %arg0, %c0_i32 : i32, i32
  }
  func.func @transform_1(%arg0: i32) -> (i32, i32) {
    %c0_i32 = arith.constant 0 : i32
    %c0_i32_0 = arith.constant 0 : i32
    %c0_i32_1 = arith.constant 0 : i32
    return %c0_i32, %c0_i32_0 : i32, i32
  }
  func.func @transform_2(%arg0: i32) -> (i32, i32) {
    %c0_i32 = arith.constant 0 : i32
    %c0_i32_0 = arith.constant 0 : i32
    %c0_i32_1 = arith.constant 0 : i32
    return %c0_i32, %c0_i32_0 : i32, i32
  }
  func.func @transform_3(%arg0: i32) -> (i32, i32) {
    %c0_i32 = arith.constant 0 : i32
    %c0_i32_0 = arith.constant 0 : i32
    %c0_i32_1 = arith.constant 0 : i32
    return %c0_i32, %c0_i32_0 : i32, i32
  }
  func.func @transform_4(%arg0: i32) -> (i32, i32) {
    %c0_i32 = arith.constant 0 : i32
    %c0_i32_0 = arith.constant 0 : i32
    %c0_i32_1 = arith.constant 0 : i32
    return %c0_i32, %c0_i32_0 : i32, i32
  }
  func.func @transform_5(%arg0: i32) -> (i32, i32) {
    %c0_i32 = arith.constant 0 : i32
    %c0_i32_0 = arith.constant 0 : i32
    %c0_i32_1 = arith.constant 0 : i32
    return %c0_i32, %c0_i32_0 : i32, i32
  }
  func.func @transform_6(%arg0: i32) -> (i32, i32) {
    %c0_i32 = arith.constant 0 : i32
    %c0_i32_0 = arith.constant 0 : i32
    %c0_i32_1 = arith.constant 0 : i32
    return %c0_i32, %c0_i32_0 : i32, i32
  }
  func.func @transform_7(%arg0: i32) -> (i32, i32) {
    %c0_i32 = arith.constant 0 : i32
    %c0_i32_0 = arith.constant 0 : i32
    return %arg0, %c0_i32 : i32, i32
  }
  func.func @transform_8(%arg0: i32) -> (i32, i32) {
    %c0_i32 = arith.constant 0 : i32
    %c0_i32_0 = arith.constant 0 : i32
    return %arg0, %c0_i32 : i32, i32
  }
}

</mosaic_0001>

<bundles_post_ra>
// kernel: tpu_custom_call.1
= control target key start
LH: loop header
LB: loop body
LE: loop exit
PB: predicated region body
PF: predicated region fallthrough
CT: control target
= control target key end

     0   :  { %14 = vsyncpa [#allocation3], 0  ;;  %s1941_s0 = inlined_call_operand.hbm [shape: f32[16,32], index: 0, kind: input, shape index: {}]   ;;  %s1942_s1 = inlined_call_operand.vmem [shape: f32[1,32], index: 1, kind: input, shape index: {}]   ;;  %s1943_s2 = inlined_call_operand.vmem [shape: f32[1,32], index: 2, kind: input, shape index: {}]   ;;  %s1944_s3 = inlined_call_operand.hbm [shape: bf16[32,96], index: 3, kind: input, shape index: {}]   ;;  %s1945_s4 = inlined_call_operand.hbm [shape: f32[1,96], index: 4, kind: input, shape index: {}]   ;;  %s1946_s5 = inlined_call_operand.vmem [shape: bf16[32,32], index: 5, kind: input, shape index: {}]   ;;  %s1947_s6 = inlined_call_operand.vmem [shape: f32[1,32], index: 6, kind: input, shape index: {}]   ;;  %s1948_s7 = inlined_call_operand.hbm [shape: f32[16,32], index: 7, kind: output, shape index: {0}]   ;;  %s1949_s8 = inlined_call_operand.vmem [shape: f32[16,8], index: 8, kind: output, shape index: {1}]  }
   0x1   :  { %15 = vsyncpa [#allocation6], 0 }
   0x2   :  { %16 = vsyncpa [#allocation4], 0  ;;  %s1586_s27 = smov [#allocation5]   ;;  %s1492_s9 = scalar_lea.hbm %s1944_s3, 256 }
   0x3   :  { %s38_s28 = sshll.u32 %s1586_s27, 4  ;;  %p1493_p0 = scmp.ne.s32.totalorder %s1944_s3, %s1492_s9  ;;  %s39_s28 = int_to_ptr.vmem [resolvable:$true] %s38_s28 }
   0x4   :  { %p1496_p1 = scmp.lt.u32.totalorder %s1492_s9, %s1944_s3 }
   0x6   :  { %p1498_p2 = pnand %p1496_p1, %p1493_p0 }
   0x8   :  { %1501 = shalt.err (!%p1498_p2)
}
   0x9   :  { %s1502_s14 = scalar_lea.vmem %s39_s28, 256  ;;  %p1507_p4 = scmp.lt.s32.totalorder %s39_s28, %s39_s28 }
   0xa   :  { %p1503_p3 = scmp.ne.s32.totalorder %s39_s28, %s1502_s14  ;;  %p1508_p5 = scmp.lt.s32.totalorder %s1502_s14, %s1502_s14 }
   0xc   :  { %p1509_p6 = por %p1508_p5, %p1507_p4 }
   0xe   :  { %p1510_p7 = pnand %p1509_p6, %p1503_p3 }
  0x10   :  { %1513 = shalt.err (!%p1510_p7)
}
  0x11   :  { %s1587_s15 = smov 64   ;;  %s1588_s16 = smov 4  }
  0x12   :  { %44 = dma.hbm_to_vmem [thread:$0]  %s1944_s3, 256, %s39_s28, [#allocation6], %s1587_s15, %s1587_s15, %s1588_s16  }
  0x13   :  { %s1589_s19 = smov [#allocation2]   ;;  %s1514_s23 = scalar_lea.hbm %s1941_s0, 256 }
  0x14   :  { %s22_s20 = sshll.u32 %s1589_s19, 4  ;;  %p1515_p8 = scmp.ne.s32.totalorder %s1941_s0, %s1514_s23  ;;  %s23_s20 = int_to_ptr.vmem [resolvable:$true] %s22_s20 }
  0x15   :  { %p1518_p9 = scmp.lt.u32.totalorder %s1514_s23, %s1941_s0 }
  0x17   :  { %p1520_p10 = pnand %p1518_p9, %p1515_p8 }
  0x19   :  { %1523 = shalt.err (!%p1520_p10)
}
  0x1a   :  { %s1524_s29 = scalar_lea.vmem %s23_s20, 256  ;;  %p1529_p12 = scmp.lt.s32.totalorder %s23_s20, %s23_s20 }
  0x1b   :  { %p1525_p11 = scmp.ne.s32.totalorder %s23_s20, %s1524_s29  ;;  %p1530_p13 = scmp.lt.s32.totalorder %s1524_s29, %s1524_s29 }
  0x1d   :  { %p1531_p0 = por %p1530_p13, %p1529_p12 }
  0x1f   :  { %p1532_p1 = pnand %p1531_p0, %p1525_p11 }
  0x21   :  { %1535 = shalt.err (!%p1532_p1)
}
  0x22   :  { %s1590_s3 = smov 128   ;;  %s1591_s28 = smov 8  }
  0x23   :  { %28 = dma.hbm_to_vmem [thread:$0]  %s1941_s0, 256, %s23_s20, [#allocation3], %s1590_s3, %s1590_s3, %s1591_s28  }
  0x24   :  { %s1592_s10 = smov [#allocation7]   ;;  %s1536_s14 = scalar_lea.hbm %s1945_s4, 16 }
  0x25   :  { %s51_s11 = sshll.u32 %s1592_s10, 4  ;;  %p1537_p2 = scmp.ne.s32.totalorder %s1945_s4, %s1536_s14  ;;  %s52_s11 = int_to_ptr.vmem [resolvable:$true] %s51_s11 }
  0x26   :  { %p1540_p3 = scmp.lt.u32.totalorder %s1536_s14, %s1945_s4 }
  0x28   :  { %p1542_p4 = pnand %p1540_p3, %p1537_p2 }
  0x2a   :  { %1545 = shalt.err (!%p1542_p4)
}
  0x2b   :  { %s1546_s21 = scalar_lea.vmem %s52_s11, 16  ;;  %s1550_s0 = scalar_lea.vmem %s52_s11, 32 }
  0x2c   :  { %p1547_p5 = scmp.ne.s32.totalorder %s52_s11, %s1546_s21  ;;  %p1551_p6 = scmp.lt.s32.totalorder %s52_s11, %s52_s11 }
  0x2d   :  { %p1552_p7 = scmp.lt.s32.totalorder %s1550_s0, %s1546_s21 }
  0x2f   :  { %p1553_p8 = por %p1552_p7, %p1551_p6 }
  0x31   :  { %p1554_p9 = pnand %p1553_p8, %p1547_p5 }
  0x33   :  { %1557 = shalt.err (!%p1554_p9)
}
  0x34   :  { %54 = dma.hbm_to_vmem [thread:$0]  %s1945_s4, 16, %s52_s11, [#allocation6]  }
  0x35   :  { %1580 = dma.done.wait [#allocation3], 256  }
  0x36   :  { %1581 = vsyncadd [#allocation3], 4294967040 }
  0x37   :  { %1582 = dma.done.wait [#allocation6], 272  }
  0x38   :  { %1583 = vsyncadd [#allocation6], 4294967024  ;;  %vm71_vm0 = vcmask 261120   ;;  %v69_v0 = vld [vmem:[#allocation2] sm:$0xff]  ;;  %v70_v1 = vld [vmem:[#allocation2 + $0x8] sm:$0xff]  ;;  %v1593_v15 = vmov 0.0  }
  0x39   :  { %v72_v2 = vsel %vm71_vm0, %v69_v0, 0.0  ;;  %v75_v3 = vsel %vm71_vm0, %v70_v1, 0.0  ;;  %v1452_v14 = vld [vmem:[#allocation5] sm:$0xff]   ;;  %1294 = vmatprep.subr.bf16.mxu0 %v1593_v15  ;;  %1302 = vmatprep.subr.bf16.mxu1 %v1593_v15  ;;  %v1453_v16 = vld [vmem:[#allocation5 + $0x8] sm:$0xff]   ;;  %vm1594_vm1 = vmmov 0   ;;  %s1597_s26 = smov 104  }
  0x3a   :  { %73 = vadd.xlane.f32.xlu0 %v72_v2  ;;  %1295 = vmatpush3.bf16.msra.mxu0 %v1452_v14  ;;  %v1230_v25 = vld [vmem:[%s1942_s1] ss:$0 sm:$0xff]  ;;  %s1595_s1 = smov 112   ;;  %s1598_s27 = smov 96   ;;  %vm216_vm2 = vcmask 64512   ;;  %vm707_vm3 = vcmask 1043456  }
  0x3b   :  { %1298 = vmatprep.mubr.msk.bf16.mxu0 %vm1594_vm1, %v1593_v15  ;;  %1296 = vmatprep.subr.bf16.mxu0 %v1593_v15  ;;  %v1231_v29 = vld [vmem:[%s1943_s2] ss:$0 sm:$0xff]  ;;  %s1596_s2 = smov 120   ;;  %s1599_s13 = smov 16   ;;  %vm1113_vm4 = vcmask 130048   ;;  %vm1116_vm5 = vcmask 195584  }
  0x3c   :  { %1304 = vmatprep.mubr.msk.bf16.mxu1 %vm1594_vm1, %v1593_v15  ;;  %v1232_v34 = vld [vmem:[#allocation7] ss:$0 sm:$0xff]  ;;  %s1600_s14 = smov 24   ;;  %s1601_s17 = smov [#allocation8]  }
  0x3d   :  { %s1213_s18 = sshll.u32 %s1601_s17, 4  ;;  %s1214_s18 = int_to_ptr.vmem [resolvable:$true] %s1213_s18 }
  0x3e   :  { %76 = vadd.xlane.f32.xlu0 %v75_v3  ;;  %1297 = vmatpush3.bf16.msra.mxu0 %v1453_v16  ;;  %s1558_s19 = scalar_lea.vmem %s1214_s18, 256  ;;  %p1563_p11 = scmp.lt.s32.totalorder %s1214_s18, %s1214_s18 }
  0x3f   :  { %1308 = vmatprep.subr.bf16.mxu0 %v1593_v15  ;;  %p1559_p10 = scmp.ne.s32.totalorder %s1214_s18, %s1558_s19  ;;  %p1564_p12 = scmp.lt.s32.totalorder %s1558_s19, %s1558_s19 }
  0x41   :  { %p1565_p13 = por %p1564_p12, %p1563_p11 }
  0x43   :  { %p1566_p0 = pnand %p1565_p13, %p1559_p10 }
  0xc7   :  { %v74_v4 = vpop.xlane.xlu0 %73 }
  0xc8   :  { %v79_v5 = vmul.f32 0.03125, %v74_v4 }
  0xca   :  { %v81_v6 = vsub.f32 %v69_v0, %v79_v5 }
  0xcb   :  { %v77_v7 = vpop.xlane.xlu0 %76 }
  0xcc   :  { %v80_v8 = vmul.f32 0.03125, %v77_v7  ;;  %v83_v9 = vmul.f32 %v81_v6, %v81_v6 }
  0xce   :  { %v82_v10 = vsub.f32 %v70_v1, %v80_v8  ;;  %v85_v11 = vsel %vm71_vm0, %v83_v9, 0.0 }
  0xcf   :  { %86 = vadd.xlane.f32.xlu1 %v85_v11 }
  0xd0   :  { %v84_v12 = vmul.f32 %v82_v10, %v82_v10 }
  0xd2   :  { %v88_v13 = vsel %vm71_vm0, %v84_v12, 0.0 }
  0xd3   :  { %89 = vadd.xlane.f32.xlu1 %v88_v13 }
 0x15c   :  { %v87_v17 = vpop.xlane.xlu1 %86 }
 0x15d   :  { %v91_v18 = vmul.f32 0.03125, %v87_v17 }
 0x15f   :  { %v93_v19 = vadd.f32 1e-05, %v91_v18 }
 0x160   :  { %v90_v20 = vpop.xlane.xlu1 %89 }
 0x161   :  { %1456 = vrsqrt.f32 %v93_v19  ;;  %v92_v21 = vmul.f32 0.03125, %v90_v20 }
 0x163   :  { %v94_v22 = vadd.f32 1e-05, %v92_v21 }
 0x165   :  { %1458 = vrsqrt.f32 %v94_v22 }
 0x16b   :  { %v1457_v23 = vpop.eup %1456 }
 0x16c   :  { %v97_v24 = vmul.f32 %v1457_v23, %v81_v6 }
 0x16e   :  { %v106_v28 = vmul.f32 %v1230_v25, %v97_v24 }
 0x16f   :  { %v1459_v26 = vpop.eup %1458 }
 0x170   :  { %v98_v27 = vmul.f32 %v1459_v26, %v82_v10  ;;  %v115_v31 = vadd.f32 %v1231_v29, %v106_v28 }
 0x172   :  { %v107_v30 = vmul.f32 %v1230_v25, %v98_v27 }
 0x174   :  { %v116_v32 = vadd.f32 %v1231_v29, %v107_v30 }
 0x176   :  { %v117_v33 = vpack.c.bf16 %v116_v32, %v115_v31 }
 0x178   :  { %1299 = vmatmul.mubr.msk.bf16.vlgmr.msra.gmra.mrb[0].mxu0 %vm71_vm0, %v117_v33 }
 0x179   :  { %1310 = vmatprep.mubr.msk.bf16.mxu0 %vm1594_vm1, %v1593_v15 }
 0x24b   :  { %v178_v35 = vpop.f32.mrb[0].mxu0 }
 0x24c   :  { %v1300_v36 = vpop.f32.mrb[1].mxu0  ;;  %v179_v38 = vadd.f32 %v1232_v34, %v178_v35 }
 0x24d   :  { %v181_v37 = vpop.f32.mrb[2].mxu0 }
 0x24e   :  { %v182_v39 = vadd.f32 %v1232_v34, %v181_v37  ;;  %v1301_v40 = vpop.f32.mrb[3].mxu0  ;;  %v205_v43 = vpack.c.bf16 %v179_v38, %v179_v38 }
 0x250   :  { %v1427_v41 = vpack.i.bf16 %v182_v39, %v179_v38  ;;  %v1709_v42 = vpack.c.bf16 %v182_v39, %v182_v39 }
 0x252   :  { %1428 = vrot.lane.b32.xlu1 %v1427_v41, %s1595_s1  ;;  %1423 = vrot.lane.b32.xlu0 %v1427_v41, %s1596_s2 }
 0x256   :  { %1433 = vrot.lane.b32.xlu1 %v1427_v41, %s1597_s26  ;;  %264 = vrot.lane.b32.xlu0 %v1709_v42, %s1598_s27 }
 0x25a   :  { %214 = vrot.lane.b32.xlu1 %v205_v43, %s1598_s27 }
 0x2c4   :  { %v1429_v44 = vpop.permute.xlu1 %1428  ;;  %v1424_v45 = vpop.permute.xlu0 %1423 }
 0x2c5   :  { %v1426_v46 = vunpack.i.h.bf16 %v1424_v45  ;;  %v1425_v47 = vunpack.i.l.bf16 %v1424_v45  ;;  %v1431_v48 = vunpack.i.h.bf16 %v1429_v44  ;;  %v1430_v49 = vunpack.i.l.bf16 %v1429_v44 }
 0x2c7   :  { %v1714_v50 = vpack.c.bf16 %v1426_v46, %v1426_v46  ;;  %v1716_v51 = vpack.c.bf16 %v1425_v47, %v1425_v47  ;;  %v1723_v55 = vpack.c.bf16 %v1431_v48, %v1431_v48  ;;  %v1725_v56 = vpack.c.bf16 %v1430_v49, %v1430_v49 }
 0x2c8   :  { %v1434_v52 = vpop.permute.xlu1 %1433  ;;  %v265_v53 = vpop.permute.xlu0 %264 }
 0x2c9   :  { %v270_v54 = vsel %vm216_vm2, %v265_v53, 0  ;;  %313 = vrot.lane.b32.xlu1 %v1716_v51, %s1598_s27  ;;  %362 = vrot.lane.b32.xlu0 %v1714_v50, %s1598_s27  ;;  %v1436_v57 = vunpack.i.h.bf16 %v1434_v52  ;;  %v1435_v58 = vunpack.i.l.bf16 %v1434_v52 }
 0x2ca   :  { %1309 = vmatpush3.bf16.xpose.msra.mxu0 %v270_v54 }
 0x2cb   :  { %1320 = vmatprep.subr.bf16.mxu0 %v1593_v15  ;;  %v1733_v61 = vpack.c.bf16 %v1436_v57, %v1436_v57  ;;  %v1735_v62 = vpack.c.bf16 %v1435_v58, %v1435_v58 }
 0x2cc   :  { %v215_v59 = vpop.permute.xlu1 %214 }
 0x2cd   :  { %411 = vrot.lane.b32.xlu1 %v1725_v56, %s1598_s27  ;;  %460 = vrot.lane.b32.xlu0 %v1723_v55, %s1598_s27  ;;  %v221_v60 = vsel %vm216_vm2, %v215_v59, 0 }
 0x2ce   :  { %1303 = vmatpush3.bf16.xpose.msra.mxu1 %v221_v60 }
 0x2cf   :  { %1314 = vmatprep.subr.bf16.mxu1 %v1593_v15 }
 0x2d1   :  { %509 = vrot.lane.b32.xlu1 %v1735_v62, %s1598_s27  ;;  %558 = vrot.lane.b32.xlu0 %v1733_v61, %s1598_s27 }
 0x2d2   :  { %1311 = vmatmul.mubr.msk.bf16.vlgmr.msra.gmra.mrb[4].mxu0 %vm216_vm2, %v1709_v42 }
 0x2d3   :  { %1322 = vmatprep.mubr.msk.bf16.mxu0 %vm1594_vm1, %v1593_v15 }
 0x2d5   :  { %1305 = vmatmul.mubr.msk.bf16.vlgmr.msra.gmra.mrb[0].mxu1 %vm216_vm2, %v205_v43  ;;  %702 = vrot.lane.b32.xlu1 %v205_v43, %s1587_s15 }
 0x2d6   :  { %1316 = vmatprep.mubr.msk.bf16.mxu1 %vm1594_vm1, %v1593_v15 }
 0x33b   :  { %v314_v63 = vpop.permute.xlu1 %313  ;;  %v363_v0 = vpop.permute.xlu0 %362 }
 0x33c   :  { %v319_v1 = vsel %vm216_vm2, %v314_v63, 0  ;;  %v368_v2 = vsel %vm216_vm2, %v363_v0, 0 }
 0x33d   :  { %1315 = vmatpush3.bf16.xpose.msra.mxu1 %v319_v1  ;;  %1321 = vmatpush3.bf16.xpose.msra.mxu0 %v368_v2 }
 0x33e   :  { %1326 = vmatprep.subr.bf16.mxu1 %v1593_v15  ;;  %1332 = vmatprep.subr.bf16.mxu0 %v1593_v15 }
 0x33f   :  { %v412_v3 = vpop.permute.xlu1 %411  ;;  %v461_v4 = vpop.permute.xlu0 %460 }
 0x340   :  { %v417_v5 = vsel %vm216_vm2, %v412_v3, 0  ;;  %v466_v6 = vsel %vm216_vm2, %v461_v4, 0 }
 0x343   :  { %v510_v7 = vpop.permute.xlu1 %509  ;;  %v559_v8 = vpop.permute.xlu0 %558 }
 0x344   :  { %1317 = vmatmul.mubr.msk.bf16.vlgmr.msra.gmra.mrb[4].mxu1 %vm216_vm2, %v1716_v51  ;;  %1323 = vmatmul.mubr.msk.bf16.vlgmr.msra.gmra.mrb[8].mxu0 %vm216_vm2, %v1714_v50  ;;  %v515_v9 = vsel %vm216_vm2, %v510_v7, 0  ;;  %v564_v10 = vsel %vm216_vm2, %v559_v8, 0 }
 0x345   :  { %1327 = vmatpush3.bf16.xpose.msra.mxu1 %v417_v5  ;;  %1333 = vmatpush3.bf16.xpose.msra.mxu0 %v466_v6 }
 0x346   :  { %1328 = vmatprep.mubr.msk.bf16.mxu1 %vm1594_vm1, %v1593_v15  ;;  %1334 = vmatprep.mubr.msk.bf16.mxu0 %vm1594_vm1, %v1593_v15 }
 0x347   :  { %1338 = vmatprep.subr.bf16.mxu1 %v1593_v15  ;;  %1344 = vmatprep.subr.bf16.mxu0 %v1593_v15  ;;  %v703_v11 = vpop.permute.xlu1 %702 }
 0x348   :  { %v709_v12 = vsel %vm707_vm3, %v703_v11, 0 }
 0x34c   :  { %1329 = vmatmul.mubr.msk.bf16.vlgmr.msra.gmra.mrb[8].mxu1 %vm216_vm2, %v1725_v56  ;;  %1335 = vmatmul.mubr.msk.bf16.vlgmr.msra.gmra.mrb[12].mxu0 %vm216_vm2, %v1723_v55 }
 0x34d   :  { %1339 = vmatpush3.bf16.xpose.msra.mxu1 %v515_v9  ;;  %1345 = vmatpush3.bf16.xpose.msra.mxu0 %v564_v10 }
 0x34e   :  { %1340 = vmatprep.mubr.msk.bf16.mxu1 %vm1594_vm1, %v1593_v15  ;;  %1346 = vmatprep.mubr.msk.bf16.mxu0 %vm1594_vm1, %v1593_v15 }
 0x34f   :  { %1350 = vmatprep.subr.bf16.mxu1 %v1593_v15  ;;  %1356 = vmatprep.subr.bf16.mxu0 %v1593_v15 }
 0x354   :  { %1341 = vmatmul.mubr.msk.bf16.vlgmr.msra.gmra.mrb[12].mxu1 %vm216_vm2, %v1735_v62  ;;  %1347 = vmatmul.mubr.msk.bf16.vlgmr.msra.gmra.mrb[16].mxu0 %vm216_vm2, %v1733_v61 }
 0x355   :  { %1351 = vmatpush3.bf16.msra.mxu1 %v709_v12  ;;  %1358 = vmatprep.mubr.msk.bf16.mxu0 %vm1594_vm1, %v1593_v15 }
 0x356   :  { %1352 = vmatprep.mubr.msk.bf16.mxu1 %vm1594_vm1, %v1593_v15  ;;  %1362 = vmatprep.subr.bf16.mxu1 %v1593_v15 }
 0x3a5   :  { %v306_v13 = vpop.f32.mrb[4].mxu0 }
 0x3a6   :  { %v1312_v14 = vpop.f32.mrb[5].mxu0  ;;  %v609_v16 = vsel %vm216_vm2, %v306_v13, -inf }
 0x3a7   :  { %610 = vmax.xlane.f32.xlu0 %v609_v16  ;;  %v309_v17 = vpop.f32.mrb[6].mxu0 }
 0x3a8   :  { %v1313_v18 = vpop.f32.mrb[7].mxu0  ;;  %v257_v19 = vpop.f32.mrb[0].mxu1 }
 0x3a9   :  { %v1306_v20 = vpop.f32.mrb[1].mxu1  ;;  %v606_v21 = vsel %vm216_vm2, %v257_v19, -inf }
 0x3aa   :  { %v260_v22 = vpop.f32.mrb[2].mxu1  ;;  %607 = vmax.xlane.f32.xlu1 %v606_v21 }
 0x3ab   :  { %v1307_v23 = vpop.f32.mrb[3].mxu1 }
 0x417   :  { %v355_v24 = vpop.f32.mrb[4].mxu1  ;;  %v404_v25 = vpop.f32.mrb[8].mxu0 }
 0x418   :  { %v1318_v26 = vpop.f32.mrb[5].mxu1  ;;  %v1324_v27 = vpop.f32.mrb[9].mxu0  ;;  %v612_v28 = vsel %vm216_vm2, %v355_v24, -inf  ;;  %v615_v33 = vsel %vm216_vm2, %v404_v25, -inf }
 0x419   :  { %v358_v29 = vpop.f32.mrb[6].mxu1  ;;  %613 = vmax.xlane.f32.xlu0 %v612_v28  ;;  %v407_v30 = vpop.f32.mrb[10].mxu0 }
 0x41a   :  { %v1319_v31 = vpop.f32.mrb[7].mxu1  ;;  %v1325_v32 = vpop.f32.mrb[11].mxu0 }
 0x41d   :  { %616 = vmax.xlane.f32.xlu0 %v615_v33 }
 0x41f   :  { %v453_v34 = vpop.f32.mrb[8].mxu1  ;;  %v1792_v35 = vpop.f32.mrb[12].mxu0 }
 0x420   :  { %v1330_v36 = vpop.f32.mrb[9].mxu1  ;;  %v1336_v37 = vpop.f32.mrb[13].mxu0  ;;  %v618_v38 = vsel %vm216_vm2, %v453_v34, -inf  ;;  %v621_v39 = vsel %vm216_vm2, %v1792_v35, -inf }
 0x421   :  { %619 = vmax.xlane.f32.xlu1 %v618_v38  ;;  %v456_v40 = vpop.f32.mrb[10].mxu1  ;;  %622 = vmax.xlane.f32.xlu0 %v621_v39  ;;  %v505_v41 = vpop.f32.mrb[14].mxu0 }
 0x422   :  { %v1331_v43 = vpop.f32.mrb[11].mxu1  ;;  %v1337_v44 = vpop.f32.mrb[15].mxu0 }
 0x427   :  { %v551_v45 = vpop.f32.mrb[12].mxu1  ;;  %v1797_v46 = vpop.f32.mrb[16].mxu0 }
 0x428   :  { %v1342_v47 = vpop.f32.mrb[13].mxu1  ;;  %v1348_v48 = vpop.f32.mrb[17].mxu0  ;;  %v624_v49 = vsel %vm216_vm2, %v551_v45, -inf  ;;  %v627_v52 = vsel %vm216_vm2, %v1797_v46, -inf }
 0x429   :  { %625 = vmax.xlane.f32.xlu1 %v624_v49  ;;  %v554_v53 = vpop.f32.mrb[14].mxu1  ;;  %628 = vmax.xlane.f32.xlu0 %v627_v52  ;;  %v603_v54 = vpop.f32.mrb[18].mxu0 }
 0x42a   :  { %v1343_v57 = vpop.f32.mrb[15].mxu1  ;;  %v1349_v58 = vpop.f32.mrb[19].mxu0 }
 0x434   :  { %v611_v59 = vpop.xlane.xlu0 %610 }
 0x435   :  { %v631_v60 = vsub.f32 %v306_v13, %v611_v59 }
 0x437   :  { %v608_v63 = vpop.xlane.xlu1 %607  ;;  %v640_v0 = vmul.f32 1.442695, %v631_v60 }
 0x438   :  { %v630_v1 = vsub.f32 %v257_v19, %v608_v63 }
 0x439   :  { %1460 = vpow2.f32 %v640_v0 }
 0x43a   :  { %799 = vrot.lane.b32.xlu1 %v1716_v51, %s1587_s15  ;;  %v638_v2 = vmul.f32 1.442695, %v630_v1 }
 0x43c   :  { %1462 = vpow2.f32 %v638_v2 }
 0x43e   :  { %847 = vrot.lane.b32.xlu1 %v1714_v50, %s1587_s15 }
 0x43f   :  { %751 = vrot.lane.b32.xlu0 %v1709_v42, %s1587_s15 }
 0x443   :  { %v1461_v3 = vpop.eup %1460 }
 0x444   :  { %v657_v4 = vsel %vm216_vm2, %v1461_v3, 0.0 }
 0x446   :  { %v1809_v5 = vpop.eup %1462 }
 0x447   :  { %v654_v50 = vsel %vm216_vm2, %v1809_v5, 0.0 }
 0x45e   :  { %658 = vadd.xlane.f32.xlu0 %v657_v4 }
 0x462   :  { %655 = vadd.xlane.f32.xlu1 %v654_v50 }
 0x473   :  { %895 = vrot.lane.b32.xlu1 %v1725_v56, %s1587_s15 }
 0x4a6   :  { %v614_v42 = vpop.xlane.xlu0 %613 }
 0x4a7   :  { %v632_v51 = vsub.f32 %v355_v24, %v614_v42 }
 0x4a9   :  { %v642_v6 = vmul.f32 1.442695, %v632_v51 }
 0x4aa   :  { %v617_v7 = vpop.xlane.xlu0 %616 }
 0x4ab   :  { %1464 = vpow2.f32 %v642_v6  ;;  %v633_v8 = vsub.f32 %v404_v25, %v617_v7 }
 0x4ad   :  { %v644_v9 = vmul.f32 1.442695, %v633_v8 }
 0x4ae   :  { %v620_v10 = vpop.xlane.xlu1 %619  ;;  %v623_v13 = vpop.xlane.xlu0 %622 }
 0x4af   :  { %1466 = vpow2.f32 %v644_v9  ;;  %v634_v11 = vsub.f32 %v453_v34, %v620_v10  ;;  %v635_v28 = vsub.f32 %v1792_v35, %v623_v13 }
 0x4b1   :  { %v646_v12 = vmul.f32 1.442695, %v634_v11  ;;  %v648_v29 = vmul.f32 1.442695, %v635_v28 }
 0x4b3   :  { %1468 = vpow2.f32 %v646_v12 }
 0x4b5   :  { %v1815_v14 = vpop.eup %1464 }
 0x4b6   :  { %v626_v16 = vpop.xlane.xlu1 %625  ;;  %v629_v17 = vpop.xlane.xlu0 %628  ;;  %v660_v56 = vsel %vm216_vm2, %v1815_v14, 0.0 }
 0x4b7   :  { %v636_v18 = vsub.f32 %v551_v45, %v626_v16  ;;  %661 = vadd.xlane.f32.xlu1 %v660_v56  ;;  %v637_v30 = vsub.f32 %v1797_v46, %v629_v17 }
 0x4b9   :  { %v1819_v19 = vpop.eup %1466  ;;  %v650_v20 = vmul.f32 1.442695, %v636_v18  ;;  %v652_v31 = vmul.f32 1.442695, %v637_v30 }
 0x4ba   :  { %v752_v21 = vpop.permute.xlu0 %751  ;;  %v663_v22 = vsel %vm216_vm2, %v1819_v19, 0.0  ;;  %v800_v32 = vpop.permute.xlu1 %799 }
 0x4bb   :  { %1470 = vpow2.f32 %v650_v20  ;;  %v757_v23 = vsel %vm707_vm3, %v752_v21, 0  ;;  %664 = vadd.xlane.f32.xlu0 %v663_v22  ;;  %v805_v46 = vsel %vm707_vm3, %v800_v32, 0 }
 0x4bc   :  { %1357 = vmatpush3.bf16.msra.mxu0 %v757_v23  ;;  %1472 = vpow2.f32 %v648_v29 }
 0x4bd   :  { %v1824_v24 = vpop.eup %1468  ;;  %1368 = vmatprep.subr.bf16.mxu0 %v1593_v15  ;;  %1474 = vpow2.f32 %v652_v31 }
 0x4be   :  { %v666_v25 = vsel %vm216_vm2, %v1824_v24, 0.0  ;;  %v848_v33 = vpop.permute.xlu1 %847 }
 0x4bf   :  { %667 = vadd.xlane.f32.xlu1 %v666_v25  ;;  %v853_v43 = vsel %vm707_vm3, %v848_v33, 0 }
 0x4c5   :  { %v1829_v26 = vpop.eup %1470 }
 0x4c6   :  { %v672_v27 = vsel %vm216_vm2, %v1829_v26, 0.0  ;;  %v1839_v36 = vpop.eup %1472 }
 0x4c7   :  { %673 = vadd.xlane.f32.xlu1 %v672_v27  ;;  %v1843_v38 = vpop.eup %1474 }
 0x4d1   :  { %943 = vrot.lane.b32.xlu0 %v1723_v55, %s1587_s15  ;;  %v669_v55 = vsel %vm216_vm2, %v1839_v36, 0.0 }
 0x4d8   :  { %991 = vrot.lane.b32.xlu1 %v1735_v62, %s1587_s15  ;;  %v675_v62 = vsel %vm216_vm2, %v1843_v38, 0.0 }
 0x4eb   :  { %v659_v34 = vpop.xlane.xlu0 %658 }
 0x4ec   :  { %1476 = vrcp.f32 %v659_v34 }
 0x4ef   :  { %v656_v37 = vpop.xlane.xlu1 %655 }
 0x4f0   :  { %1478 = vrcp.f32 %v656_v37  ;;  %670 = vadd.xlane.f32.xlu0 %v669_v55 }
 0x4f3   :  { %v896_v47 = vpop.permute.xlu1 %895 }
 0x4f4   :  { %676 = vadd.xlane.f32.xlu0 %v675_v62  ;;  %v901_v59 = vsel %vm707_vm3, %v896_v47, 0 }
 0x4f6   :  { %v1477_v35 = vpop.eup %1476 }
 0x4f7   :  { %v1847_v39 = vmul.f32 %v1477_v35, %v1461_v3 }
 0x4f9   :  { %v695_v40 = vpack.c.bf16 %v1847_v39, %v1847_v39  ;;  %v1196_v21 = vsel %vm216_vm2, %v1847_v39, 0.0 }
 0x4fa   :  { %v1479_v41 = vpop.eup %1478 }
 0x4fb   :  { %v679_v44 = vmul.f32 %v1479_v41, %v1809_v5  ;;  %1359 = vmatmul.mubr.msk.bf16.vlgmr.msra.gmra.mrb[20].mxu0 %vm216_vm2, %v695_v40 }
 0x4fc   :  { %1369 = vmatpush3.bf16.msra.mxu0 %v853_v43  ;;  %1370 = vmatprep.mubr.msk.bf16.mxu0 %vm1594_vm1, %v1593_v15 }
 0x4fd   :  { %v694_v45 = vpack.c.bf16 %v679_v44, %v679_v44  ;;  %1380 = vmatprep.subr.bf16.mxu0 %v1593_v15  ;;  %v1189_v51 = vsel %vm216_vm2, %v679_v44, 0.0 }
 0x4ff   :  { %1353 = vmatmul.mubr.msk.bf16.vlgmr.msra.gmra.mrb[16].mxu1 %vm216_vm2, %v694_v45 }
 0x500   :  { %1363 = vmatpush3.bf16.msra.mxu1 %v805_v46  ;;  %1364 = vmatprep.mubr.msk.bf16.mxu1 %vm1594_vm1, %v1593_v15 }
 0x501   :  { %1374 = vmatprep.subr.bf16.mxu1 %v1593_v15 }
 0x50a   :  { %1039 = vrot.lane.b32.xlu0 %v1733_v61, %s1587_s15 }
 0x544   :  { %v662_v48 = vpop.xlane.xlu1 %661 }
 0x545   :  { %1480 = vrcp.f32 %v662_v48 }
 0x548   :  { %v665_v49 = vpop.xlane.xlu0 %664 }
 0x549   :  { %1482 = vrcp.f32 %v665_v49 }
 0x54c   :  { %v668_v52 = vpop.xlane.xlu1 %667  ;;  %v944_v61 = vpop.permute.xlu0 %943 }
 0x54d   :  { %1484 = vrcp.f32 %v668_v52  ;;  %v949_v3 = vsel %vm707_vm3, %v944_v61, 0  ;;  %v1455_v61 = vld [vmem:[%s1946_s5 + $0x8] sm:$0xff]  }
 0x54f   :  { %v1481_v53 = vpop.eup %1480 }
 0x550   :  { %v683_v54 = vmul.f32 %v1481_v53, %v1815_v14 }
 0x552   :  { %v696_v57 = vpack.c.bf16 %v683_v54, %v683_v54  ;;  %v1190_v50 = vsel %vm216_vm2, %v683_v54, 0.0 }
 0x553   :  { %v1483_v58 = vpop.eup %1482  ;;  %v1191_v8 = vadd.f32 %v1190_v50, %v1189_v51 }
 0x554   :  { %v685_v60 = vmul.f32 %v1483_v58, %v1819_v19  ;;  %1365 = vmatmul.mubr.msk.bf16.vlgmr.msra.gmra.mrb[20].mxu1 %vm216_vm2, %v696_v57  ;;  %v674_v63 = vpop.xlane.xlu1 %673 }
 0x555   :  { %1375 = vmatpush3.bf16.msra.mxu1 %v901_v59  ;;  %1486 = vrcp.f32 %v674_v63  ;;  %1376 = vmatprep.mubr.msk.bf16.mxu1 %vm1594_vm1, %v1593_v15  ;;  %v1454_v63 = vld [vmem:[%s1946_s5] sm:$0xff]  }
 0x556   :  { %v697_v0 = vpack.c.bf16 %v685_v60, %v685_v60  ;;  %1386 = vmatprep.subr.bf16.mxu1 %v1593_v15  ;;  %v1197_v18 = vsel %vm216_vm2, %v685_v60, 0.0 }
 0x557   :  { %v1485_v1 = vpop.eup %1484  ;;  %v1198_v25 = vadd.f32 %v1197_v18, %v1196_v21 }
 0x558   :  { %v687_v2 = vmul.f32 %v1485_v1, %v1824_v24  ;;  %1371 = vmatmul.mubr.msk.bf16.vlgmr.msra.gmra.mrb[24].mxu0 %vm216_vm2, %v697_v0  ;;  %v992_v4 = vpop.permute.xlu1 %991 }
 0x559   :  { %1381 = vmatpush3.bf16.msra.mxu0 %v949_v3  ;;  %1382 = vmatprep.mubr.msk.bf16.mxu0 %vm1594_vm1, %v1593_v15  ;;  %v997_v42 = vsel %vm707_vm3, %v992_v4, 0 }
 0x55a   :  { %v698_v5 = vpack.c.bf16 %v687_v2, %v687_v2  ;;  %1392 = vmatprep.subr.bf16.mxu0 %v1593_v15  ;;  %v1192_v6 = vsel %vm216_vm2, %v687_v2, 0.0 }
 0x55b   :  { %v1193_v10 = vadd.f32 %v1192_v6, %v1191_v8 }
 0x55c   :  { %1377 = vmatmul.mubr.msk.bf16.vlgmr.msra.gmra.mrb[24].mxu1 %vm216_vm2, %v698_v5 }
 0x55d   :  { %1387 = vmatpush3.bf16.msra.mxu1 %v997_v42  ;;  %1388 = vmatprep.mubr.msk.bf16.mxu1 %vm1594_vm1, %v1593_v15 }
 0x55e   :  { %1398 = vmatprep.subr.bf16.mxu1 %v1593_v15 }
 0x55f   :  { %v1487_v7 = vpop.eup %1486 }
 0x560   :  { %v691_v9 = vmul.f32 %v1487_v7, %v1829_v26 }
 0x562   :  { %v1194_v11 = vsel %vm216_vm2, %v691_v9, 0.0  ;;  %v700_v12 = vpack.c.bf16 %v691_v9, %v691_v9 }
 0x563   :  { %v1195_v13 = vadd.f32 %v1194_v11, %v1193_v10 }
 0x564   :  { %1389 = vmatmul.mubr.msk.bf16.vlgmr.msra.gmra.mrb[28].mxu1 %vm216_vm2, %v700_v12 }
 0x565   :  { %v1204_v14 = vmul.f32 0.25, %v1195_v13  ;;  %1402 = vmatprep.mubr.msk.bf16.mxu1 %vm1594_vm1, %v1593_v15  ;;  %1399 = vmatpush3.bf16.msra.mxu1 %v1454_v63 }
 0x566   :  { %1400 = vmatprep.subr.bf16.mxu1 %v1593_v15 }
 0x567   :  { %1206 = vst.msk [vmem:[%s1949_s8] sm:$0xff] %vm216_vm2, %v1204_v14 }
 0x569   :  { %1401 = vmatpush3.bf16.msra.mxu1 %v1455_v61 }
 0x57d   :  { %v671_v16 = vpop.xlane.xlu0 %670 }
 0x57e   :  { %1488 = vrcp.f32 %v671_v16 }
 0x581   :  { %v677_v17 = vpop.xlane.xlu0 %676 }
 0x582   :  { %1490 = vrcp.f32 %v677_v17 }
 0x585   :  { %v1040_v20 = vpop.permute.xlu0 %1039 }
 0x586   :  { %v1045_v27 = vsel %vm707_vm3, %v1040_v20, 0 }
 0x588   :  { %v1489_v56 = vpop.eup %1488 }
 0x589   :  { %v689_v19 = vmul.f32 %v1489_v56, %v1839_v36 }
 0x58b   :  { %v1199_v22 = vsel %vm216_vm2, %v689_v19, 0.0  ;;  %v699_v23 = vpack.c.bf16 %v689_v19, %v689_v19 }
 0x58c   :  { %v1491_v24 = vpop.eup %1490  ;;  %v1200_v28 = vadd.f32 %v1199_v22, %v1198_v25  ;;  %v1252_v22 = vld [vmem:[%s1947_s6] ss:$0 sm:$0xff] }
 0x58d   :  { %v693_v26 = vmul.f32 %v1491_v24, %v1843_v38  ;;  %1383 = vmatmul.mubr.msk.bf16.vlgmr.msra.gmra.mrb[28].mxu0 %vm216_vm2, %v699_v23 }
 0x58e   :  { %1393 = vmatpush3.bf16.msra.mxu0 %v1045_v27  ;;  %1394 = vmatprep.mubr.msk.bf16.mxu0 %vm1594_vm1, %v1593_v15 }
 0x58f   :  { %v1201_v29 = vsel %vm216_vm2, %v693_v26, 0.0  ;;  %v701_v32 = vpack.c.bf16 %v693_v26, %v693_v26 }
 0x590   :  { %v1202_v30 = vadd.f32 %v1201_v29, %v1200_v28 }
 0x592   :  { %v1205_v31 = vmul.f32 0.25, %v1202_v30 }
 0x594   :  { %1207 = vst.msk [vmem:[%s1949_s8 + $0x8] sm:$0xff] %vm216_vm2, %v1205_v31 }
 0x595   :  { %1395 = vmatmul.mubr.msk.bf16.vlgmr.msra.gmra.mrb[32].mxu0 %vm216_vm2, %v701_v32 }
 0x5ce   :  { %v793_v33 = vpop.f32.mrb[20].mxu0 }
 0x5cf   :  { %v1360_v34 = vpop.f32.mrb[21].mxu0 }
 0x5d0   :  { %v796_v36 = vpop.f32.mrb[22].mxu0 }
 0x5d1   :  { %v1361_v37 = vpop.f32.mrb[23].mxu0 }
 0x5d2   :  { %v745_v55 = vpop.f32.mrb[16].mxu1 }
 0x5d3   :  { %v1354_v38 = vpop.f32.mrb[17].mxu1 }
 0x5d4   :  { %v748_v62 = vpop.f32.mrb[18].mxu1 }
 0x5d5   :  { %v1355_v35 = vpop.f32.mrb[19].mxu1 }
 0x627   :  { %v841_v39 = vpop.f32.mrb[20].mxu1 }
 0x628   :  { %v1366_v40 = vpop.f32.mrb[21].mxu1 }
 0x629   :  { %v844_v41 = vpop.f32.mrb[22].mxu1 }
 0x62a   :  { %v1367_v43 = vpop.f32.mrb[23].mxu1 }
 0x62b   :  { %v889_v44 = vpop.f32.mrb[24].mxu0 }
 0x62c   :  { %v1437_v45 = vpack.i.bf16 %v889_v44, %v841_v39  ;;  %v1372_v46 = vpop.f32.mrb[25].mxu0 }
 0x62d   :  { %v892_v47 = vpop.f32.mrb[26].mxu0 }
 0x62e   :  { %1438 = vrot.lane.b32.xlu1 %v1437_v45, %s1591_s28  ;;  %v1373_v48 = vpop.f32.mrb[27].mxu0 }
 0x62f   :  { %v937_v49 = vpop.f32.mrb[24].mxu1 }
 0x630   :  { %v1378_v52 = vpop.f32.mrb[25].mxu1 }
 0x631   :  { %v940_v53 = vpop.f32.mrb[26].mxu1 }
 0x632   :  { %v1379_v54 = vpop.f32.mrb[27].mxu1 }
 0x637   :  { %v1033_v57 = vpop.f32.mrb[28].mxu1 }
 0x638   :  { %v1390_v58 = vpop.f32.mrb[29].mxu1 }
 0x639   :  { %v1036_v59 = vpop.f32.mrb[30].mxu1 }
 0x63a   :  { %v1391_v60 = vpop.f32.mrb[31].mxu1 }
 0x660   :  { %v985_v0 = vpop.f32.mrb[28].mxu0 }
 0x661   :  { %v1442_v1 = vpack.i.bf16 %v985_v0, %v937_v49  ;;  %v1384_v2 = vpop.f32.mrb[29].mxu0 }
 0x662   :  { %v988_v3 = vpop.f32.mrb[30].mxu0 }
 0x663   :  { %1443 = vrot.lane.b32.xlu0 %v1442_v1, %s1599_s13  ;;  %v1385_v4 = vpop.f32.mrb[31].mxu0 }
 0x668   :  { %v1081_v5 = vpop.f32.mrb[32].mxu0 }
 0x669   :  { %v1447_v50 = vpack.i.bf16 %v1081_v5, %v1033_v57  ;;  %v1396_v42 = vpop.f32.mrb[33].mxu0 }
 0x66a   :  { %v1084_v51 = vpop.f32.mrb[34].mxu0 }
 0x66b   :  { %1448 = vrot.lane.b32.xlu1 %v1447_v50, %s1600_s14  ;;  %v1397_v6 = vpop.f32.mrb[35].mxu0 }
 0x6a0   :  { %v1439_v15 = vpop.permute.xlu1 %1438 }
 0x6a1   :  { %v1441_v8 = vunpack.i.h.bf16 %v1439_v15  ;;  %v1440_v9 = vunpack.i.l.bf16 %v1439_v15 }
 0x6a3   :  { %v1112_v13 = vsel %vm216_vm2, %v793_v33, %v1441_v8  ;;  %v1111_v14 = vsel %vm216_vm2, %v745_v55, %v1440_v9 }
 0x6d5   :  { %v1444_v7 = vpop.permute.xlu0 %1443 }
 0x6d6   :  { %v1446_v10 = vunpack.i.h.bf16 %v1444_v7  ;;  %v1445_v11 = vunpack.i.l.bf16 %v1444_v7 }
 0x6d8   :  { %v1115_v56 = vsel %vm1113_vm4, %v1112_v13, %v1446_v10  ;;  %v1114_v18 = vsel %vm1113_vm4, %v1111_v14, %v1445_v11 }
 0x6dd   :  { %v1449_v12 = vpop.permute.xlu1 %1448 }
 0x6de   :  { %v1451_v16 = vunpack.i.h.bf16 %v1449_v12  ;;  %v1450_v17 = vunpack.i.l.bf16 %v1449_v12 }
 0x6e0   :  { %v1118_v19 = vsel %vm1116_vm5, %v1115_v56, %v1451_v16  ;;  %v1117_v20 = vsel %vm1116_vm5, %v1114_v18, %v1450_v17 }
 0x6e1   :  { %v1119_v21 = vpack.c.bf16 %v1118_v19, %v1117_v20 }
 0x6e3   :  { %1403 = vmatmul.mubr.msk.bf16.vlgmr.msra.gmra.mrb[32].mxu1 %vm71_vm0, %v1119_v21 }
 0x7b6   :  { %v1180_v23 = vpop.f32.mrb[32].mxu1 }
 0x7b7   :  { %v1181_v24 = vadd.f32 %v1252_v22, %v1180_v23  ;;  %v1404_v25 = vpop.f32.mrb[33].mxu1 }
 0x7b8   :  { %v1183_v26 = vpop.f32.mrb[34].mxu1 }
 0x7b9   :  { %1187 = vst.msk [vmem:[#allocation8] sm:$0xff] %vm71_vm0, %v1181_v24  ;;  %v1184_v27 = vadd.f32 %v1252_v22, %v1183_v26  ;;  %v1405_v28 = vpop.f32.mrb[35].mxu1 }
 0x7bb   :  { %1188 = vst.msk [vmem:[#allocation8 + $0x8] sm:$0xff] %vm71_vm0, %v1184_v27 }
 0x7bc   :  { %1569 = shalt.err (!%p1566_p0)
}
 0x7bd   :  { %s1570_s0 = scalar_lea.hbm %s1948_s7, 256 }
 0x7be   :  { %p1571_p1 = scmp.ne.s32.totalorder %s1948_s7, %s1570_s0  ;;  %p1574_p2 = scmp.lt.u32.totalorder %s1570_s0, %s1948_s7 }
 0x7c0   :  { %p1576_p3 = pnand %p1574_p2, %p1571_p1 }
 0x7c2   :  { %1579 = shalt.err (!%p1576_p3)
}
 0x7c3   :  { %1219 = dma.vmem_to_hbm [thread:$0]  %s1214_s18, 256, %s1948_s7, [#allocation4], %s1590_s3, %s1590_s3, %s1591_s28  }
 0x7c4   :  { %1584 = dma.done.wait [#allocation4], 256  }
 0x7c5   :  { %1585 = vsyncadd [#allocation4], 4294967040 }
 0x7c6   :  { %1227 = vsyncpa [#allocation3], 1 }
 0x7c7   :  { %1228 = vsyncpa [#allocation6], 1 }
 0x7c8   :  { %1229 = vsyncpa [#allocation4], 1 }

</bundles_post_ra>
